<compile_context>
chip_gen: v5e
topology: v5e:2x2
jax: 0.10.0
libtpu: 0.0.40
codegen_flags: <defaults>
</compile_context>

<pallas_src>
import functools

import jax
import jax.numpy as jnp
from jax.experimental import pallas as pl
from jax.experimental.pallas import tpu as pltpu


def _make_crps_kernel(thresh: float, batch_size: int, num_bins: int,
                      tile_b: int, use_scale: bool, needs_mask: bool):
    thresh = float(thresh)
    inv_b = 1.0 / float(batch_size)
    c0 = 1e-07 / float(num_bins)

    def kernel(gnd_i_ref, gnd_s_ref, lik_ref, *rest):
        # gnd_i_ref : SMEM (2,) int32   [gnd_idx_1, gnd_idx_2 (-1 == unused)]
        # gnd_s_ref : SMEM (2,) float32 ground-truth CDF step heights
        #                               (0.5 * scale[g]; 0.0 when unused)
        # lik_ref   : VMEM (TB, N)      raw FC logits tile (native dtype)
        # scale_ref : VMEM (1, N)       bin_center (only when idx=False)
        # out_ref   : SMEM (1,) float32 scalar CRPS value
        # acc_ref   : SMEM (1,) float32 running sum of squared CDF diffs
        if use_scale:
            scale_ref, out_ref, acc_ref = rest
        else:
            out_ref, acc_ref = rest
            scale_ref = None

        step = pl.program_id(0)

        @pl.when(step == 0)
        def _():
            acc_ref[0] = 0.0

        lik = lik_ref[...].astype(jnp.float32)                       # (TB, N)

        # Softplus (torch.nn.Softplus, beta=1, threshold=20).
        sp = jnp.where(lik > 20.0,
                       lik,
                       jnp.log1p(jnp.exp(jnp.minimum(lik, 20.0))))

        # (1e-7/N + softplus) / (1e-7 + row_sum(softplus)) — one divide/row.
        row_sum = jnp.sum(sp, axis=1, keepdims=True)                 # (TB, 1)
        inv1 = 1.0 / (1e-07 + row_sum)                               # (TB, 1)
        p = (c0 + sp) * inv1                                         # (TB, N)

        # renormalize(): relu(p - thresh); all-zero rows stay all zero
        # (PyTorch produces NaN rows then explicitly zeroes them).
        d = jnp.maximum(p - thresh, 0.0)                             # (TB, N)
        ds = jnp.sum(d, axis=1, keepdims=True)                       # (TB, 1)
        inv2 = jnp.where(ds > 0.0, 1.0 / jnp.where(ds > 0.0, ds, 1.0), 0.0)
        x = d * inv2                                                 # (TB, N)

        if use_scale:                                                # idx=False
            x = x * scale_ref[...]                                   # * bin_center

        # Cumulative sum along bins: MXU matmul with an upper-triangular ones
        # matrix generated in-kernel (no N^2 constant pulled from HBM).
        row_i = jax.lax.broadcasted_iota(jnp.int32, (num_bins, num_bins), 0)
        col_i = jax.lax.broadcasted_iota(jnp.int32, (num_bins, num_bins), 1)
        tri = (row_i <= col_i).astype(jnp.float32)                   # (N, N)
        cum_lik = jnp.dot(x, tri, preferred_element_type=jnp.float32)  # (TB, N)

        # Ground-truth CDF is identical for every row: a single (1, N) step
        # function, no matmul and no (B, N) one-hot needed.
        col = jax.lax.broadcasted_iota(jnp.int32, (1, num_bins), 1)
        g1 = gnd_i_ref[0]
        g2 = gnd_i_ref[1]
        hs1 = gnd_s_ref[0]
        hs2 = gnd_s_ref[1]        # already 0.0 when the second index is unused
        cum_gnd = (jnp.where(col >= g1, hs1, 0.0)
                   + jnp.where(col >= g2, hs2, 0.0))                 # (1, N)

        diff = cum_lik - cum_gnd                                     # (TB, N)
        sq = diff * diff
        if needs_mask:
            rows = (jax.lax.broadcasted_iota(jnp.int32, (tile_b, 1), 0)
                    + step * tile_b)
            row_sq = jnp.sum(sq, axis=1, keepdims=True)              # (TB, 1)
            tile_sum = jnp.sum(jnp.where(rows < batch_size, row_sq, 0.0))
        else:
            tile_sum = jnp.sum(sq)

        acc_ref[0] = acc_ref[0] + tile_sum

        @pl.when(step == pl.num_programs(0) - 1)
        def _():
            out_ref[0] = acc_ref[0] * inv_b

    return kernel


@functools.partial(jax.jit, static_argnames=("thresh", "flag", "idx"))
def crps_pallas(likelihood, gnd_idx_1, gnd_idx_2, bin_center,
                *, thresh: float, flag: bool = True, idx: bool = True):
    """Pallas CRPS forward. likelihood: (B, N). Returns scalar float32."""
    B, N = likelihood.shape

    # Batch tile: 512 rows for large batches (multiple of 128 and 256 -> good
    # MXU M on v5e/v6e/v7x, ~1 MiB/tile at N=128 so double-buffering fits well
    # under even v7x's 32 MiB scoped-VMEM default); otherwise one 8-aligned
    # tile covering the whole batch.
    if B >= 512:
        tb = 512
    else:
        tb = max(8, ((B + 7) // 8) * 8)
    padded_b = ((B + tb - 1) // tb) * tb
    lik = likelihood                       # native dtype; cast to f32 in VMEM
    if padded_b != B:
        lik = jnp.pad(likelihood, ((0, padded_b - B), (0, 0)))
    grid = (padded_b // tb,)
    needs_mask = padded_b != B

    # Scalar side-band: indices + ground-truth CDF step heights. "Second
    # index unused" (flag=False or gnd_idx_2 == inf) -> index -1, height 0.
    g2f = jnp.asarray(gnd_idx_2, jnp.float32)
    use2 = jnp.logical_and(jnp.asarray(flag), jnp.isfinite(g2f))
    g1 = jnp.asarray(gnd_idx_1, jnp.int32)
    g2 = jnp.where(use2, g2f.astype(jnp.int32), jnp.int32(-1))
    gnd_i = jnp.stack([g1, g2])                                      # (2,) i32

    if idx:
        hs1 = jnp.float32(0.5)
        hs2 = jnp.where(use2, jnp.float32(0.5), jnp.float32(0.0))
        scale_args = ()
        scale_specs = []
    else:
        bc = jnp.asarray(bin_center, jnp.float32).reshape(N)
        hs1 = 0.5 * bc[g1]
        hs2 = jnp.where(use2, 0.5 * bc[jnp.clip(g2, 0, N - 1)], 0.0)
        scale_args = (bc.reshape(1, N),)
        scale_specs = [pl.BlockSpec((1, N), lambda i: (0, 0))]
    gnd_s = jnp.stack([jnp.asarray(hs1, jnp.float32),
                       jnp.asarray(hs2, jnp.float32)])               # (2,) f32

    kernel = _make_crps_kernel(thresh, B, N, tb, not idx, needs_mask)
    out = pl.pallas_call(
        kernel,
        out_shape=jax.ShapeDtypeStruct((1,), jnp.float32),
        grid=grid,
        in_specs=[
            pl.BlockSpec(memory_space=pltpu.MemorySpace.SMEM),   # gnd indices
            pl.BlockSpec(memory_space=pltpu.MemorySpace.SMEM),   # gnd step heights
            pl.BlockSpec((tb, N), lambda i: (i, 0)),             # likelihood tile
            *scale_specs,                                        # bin_center (idx=False)
        ],
        out_specs=pl.BlockSpec(memory_space=pltpu.MemorySpace.SMEM),
        scratch_shapes=[pltpu.SMEM((1,), jnp.float32)],
        compiler_params=pltpu.CompilerParams(
            dimension_semantics=("arbitrary",),
            vmem_limit_bytes=32 * 1024 * 1024),
    )(gnd_i, gnd_s, lik, *scale_args)
    return out[0]


def crps_reference(likelihood, gnd_idx_1, gnd_idx_2, bin_center,
                   *, thresh, flag=True, idx=True):
    """Pure-JAX reference mirroring the PyTorch forward."""
    lik = likelihood.astype(jnp.float32)
    B, N = lik.shape
    sp = jax.nn.softplus(lik)
    p = (1e-07 / N + sp) / (1e-07 + jnp.sum(sp, axis=1, keepdims=True))
    d = jnp.maximum(p - thresh, 0.0)
    ds = jnp.sum(d, axis=1, keepdims=True)
    re = jnp.where(ds > 0.0, d / jnp.where(ds > 0.0, ds, 1.0), 0.0)
    gnd = jnp.zeros((B, N), jnp.float32).at[:, int(gnd_idx_1)].set(0.5)
    if flag and bool(jnp.isfinite(jnp.asarray(gnd_idx_2, jnp.float32))):
        gnd = gnd.at[:, int(gnd_idx_2)].set(0.5)
    scale = jnp.ones((N,)) if idx else jnp.asarray(bin_center, jnp.float32)
    cum_l = jnp.cumsum(re * scale, axis=1)
    cum_g = jnp.cumsum(gnd * scale, axis=1)
    return jnp.sum(jnp.square(cum_l - cum_g)) / B


if __name__ == "__main__":
    key = jax.random.PRNGKey(0)
    B, N = 8, 128

    # Deterministic module "parameters" (constructor args — not a checkpoint).
    thresh = 0.006
    bin_center = jnp.linspace(0.0, 1.0, N, dtype=jnp.float32)
    flag = True

    # Example inputs.
    likelihood = jax.random.normal(key, (B, N), dtype=jnp.float32)
    gnd_idx_1 = 10
    gnd_idx_2 = 42

    # idx=True (index space).
    out = jax.block_until_ready(
        crps_pallas(likelihood, gnd_idx_1, gnd_idx_2, bin_center,
                    thresh=thresh, flag=flag, idx=True))
    ref = crps_reference(likelihood, gnd_idx_1, gnd_idx_2, bin_center,
                         thresh=thresh, flag=flag, idx=True)
    assert jnp.allclose(out, ref, rtol=1e-4, atol=1e-5), (out, ref)

    # idx=False (parameter space, uses bin_center).
    out2 = jax.block_until_ready(
        crps_pallas(likelihood, gnd_idx_1, gnd_idx_2, bin_center,
                    thresh=thresh, flag=flag, idx=False))
    ref2 = crps_reference(likelihood, gnd_idx_1, gnd_idx_2, bin_center,
                          thresh=thresh, flag=flag, idx=False)
    assert jnp.allclose(out2, ref2, rtol=1e-4, atol=1e-5), (out2, ref2)

    # gnd_idx_2 == inf path (second index unused).
    out3 = jax.block_until_ready(
        crps_pallas(likelihood, gnd_idx_1, float("inf"), bin_center,
                    thresh=thresh, flag=flag, idx=True))
    ref3 = crps_reference(likelihood, gnd_idx_1, float("inf"), bin_center,
                          thresh=thresh, flag=flag, idx=True)
    assert jnp.allclose(out3, ref3, rtol=1e-4, atol=1e-5), (out3, ref3)

    # Non-8-multiple batch exercises the padded/masked tile path.
    likelihood_b = jax.random.normal(jax.random.PRNGKey(1), (10, N),
                                     dtype=jnp.float32)
    out4 = jax.block_until_ready(
        crps_pallas(likelihood_b, gnd_idx_1, gnd_idx_2, bin_center,
                    thresh=thresh, flag=flag, idx=True))
    ref4 = crps_reference(likelihood_b, gnd_idx_1, gnd_idx_2, bin_center,
                          thresh=thresh, flag=flag, idx=True)
    assert jnp.allclose(out4, ref4, rtol=1e-4, atol=1e-5), (out4, ref4)

    print("KERNEL_OK")
</pallas_src>

<mosaic_0001>
module attributes {stable_mosaic.version = 11 : i64} {
  func.func @kernel(%arg0: i32, %arg1: memref<2xi32, #tpu.memory_space<smem>>, %arg2: memref<2xf32, #tpu.memory_space<smem>>, %arg3: memref<8x128xf32, #tpu.memory_space<vmem>>, %arg4: memref<1xf32, #tpu.memory_space<smem>>, %arg5: memref<1xf32, #tpu.memory_space<smem>>) attributes {dimension_semantics = [#tpu.dimension_semantics<arbitrary>], iteration_bounds = array<i64: 1>, scalar_prefetch = 0 : i64, scratch_operands = 1 : i64, tpu.core_type = #tpu.core_type<tc>, window_params = [{transform_indices = @transform_0, window_bounds = array<i64: 2>}, {transform_indices = @transform_1, window_bounds = array<i64: 2>}, {transform_indices = @transform_2, window_bounds = array<i64: 8, 128>}, {transform_indices = @transform_3, window_bounds = array<i64: 1>}]} {
    %c0_i32 = arith.constant 0 : i32
    %0 = arith.cmpi eq, %arg0, %c0_i32 : i32
    %1 = arith.extui %0 : i1 to i32
    %c0_i32_0 = arith.constant 0 : i32
    %2 = arith.cmpi ne, %1, %c0_i32_0 : i32
    scf.if %2 {
      %cst_26 = arith.constant 0.000000e+00 : f32
      %c0_27 = arith.constant 0 : index
      %74 = memref.load %arg5[%c0_27] : memref<1xf32, #tpu.memory_space<smem>>
      memref.store %cst_26, %arg5[%c0_27] : memref<1xf32, #tpu.memory_space<smem>>
    } else {
    }
    %c0 = arith.constant 0 : index
    %c0_1 = arith.constant 0 : index
    %3 = vector.load %arg3[%c0, %c0_1] : memref<8x128xf32, #tpu.memory_space<vmem>>, vector<8x128xf32>
    %cst = arith.constant 2.000000e+01 : f32
    %4 = vector.broadcast %cst : f32 to vector<8x128xf32>
    %5 = arith.cmpf ogt, %3, %4 : vector<8x128xf32>
    %cst_2 = arith.constant 2.000000e+01 : f32
    %6 = vector.broadcast %cst_2 : f32 to vector<8x128xf32>
    %7 = arith.minimumf %3, %6 : vector<8x128xf32>
    %8 = math.exp %7 : vector<8x128xf32>
    %9 = math.log1p %8 : vector<8x128xf32>
    %10 = arith.select %5, %3, %9 : vector<8x128xi1>, vector<8x128xf32>
    %cst_3 = arith.constant dense<0.000000e+00> : vector<8xf32>
    %11 = vector.multi_reduction <add>, %10, %cst_3 [1] : vector<8x128xf32> to vector<8xf32>
    %12 = vector.shape_cast %11 : vector<8xf32> to vector<8x1xf32>
    %cst_4 = arith.constant 1.000000e-07 : f32
    %13 = vector.broadcast %cst_4 : f32 to vector<8x1xf32>
    %14 = arith.addf %13, %12 : vector<8x1xf32>
    %cst_5 = arith.constant 1.000000e+00 : f32
    %15 = vector.broadcast %cst_5 : f32 to vector<8x1xf32>
    %16 = arith.divf %15, %14 : vector<8x1xf32>
    %cst_6 = arith.constant 7.812500e-10 : f32
    %17 = vector.broadcast %cst_6 : f32 to vector<8x128xf32>
    %18 = arith.addf %17, %10 : vector<8x128xf32>
    %19 = vector.broadcast %16 : vector<8x1xf32> to vector<8x128xf32>
    %20 = arith.mulf %18, %19 : vector<8x128xf32>
    %cst_7 = arith.constant 6.000000e-03 : f32
    %21 = vector.broadcast %cst_7 : f32 to vector<8x128xf32>
    %22 = arith.subf %20, %21 : vector<8x128xf32>
    %cst_8 = arith.constant 0.000000e+00 : f32
    %23 = vector.broadcast %cst_8 : f32 to vector<8x128xf32>
    %24 = arith.maximumf %22, %23 : vector<8x128xf32>
    %cst_9 = arith.constant dense<0.000000e+00> : vector<8xf32>
    %25 = vector.multi_reduction <add>, %24, %cst_9 [1] : vector<8x128xf32> to vector<8xf32>
    %26 = vector.shape_cast %25 : vector<8xf32> to vector<8x1xf32>
    %cst_10 = arith.constant 0.000000e+00 : f32
    %27 = vector.broadcast %cst_10 : f32 to vector<8x1xf32>
    %28 = arith.cmpf ogt, %26, %27 : vector<8x1xf32>
    %cst_11 = arith.constant 0.000000e+00 : f32
    %29 = vector.broadcast %cst_11 : f32 to vector<8x1xf32>
    %30 = arith.cmpf ogt, %26, %29 : vector<8x1xf32>
    %cst_12 = arith.constant 1.000000e+00 : f32
    %31 = vector.broadcast %cst_12 : f32 to vector<8x1xf32>
    %32 = arith.select %30, %26, %31 : vector<8x1xi1>, vector<8x1xf32>
    %cst_13 = arith.constant 1.000000e+00 : f32
    %33 = vector.broadcast %cst_13 : f32 to vector<8x1xf32>
    %34 = arith.divf %33, %32 : vector<8x1xf32>
    %cst_14 = arith.constant 0.000000e+00 : f32
    %35 = vector.broadcast %cst_14 : f32 to vector<8x1xf32>
    %36 = arith.select %28, %34, %35 : vector<8x1xi1>, vector<8x1xf32>
    %37 = vector.broadcast %36 : vector<8x1xf32> to vector<8x128xf32>
    %38 = arith.mulf %24, %37 : vector<8x128xf32>
    %39 = tpu.iota {dimensions = array<i32: 0>} : vector<128x128xi32>
    %40 = tpu.iota {dimensions = array<i32: 1>} : vector<128x128xi32>
    %41 = arith.cmpi sle, %39, %40 : vector<128x128xi32>
    %42 = arith.extui %41 : vector<128x128xi1> to vector<128x128xi32>
    %43 = arith.sitofp %42 : vector<128x128xi32> to vector<128x128xf32>
    %cst_15 = arith.constant dense<0.000000e+00> : vector<8x128xf32>
    %44 = tpu.matmul %38, %43, %cst_15 {dimension_numbers = #tpu.dot_dimension_numbers<[1], [0], [0], [1], [0, 0, 1, 1], [], []>} : vector<8x128xf32>, vector<128x128xf32>, vector<8x128xf32> -> vector<8x128xf32>
    %45 = tpu.iota {dimensions = array<i32: 1>} : vector<1x128xi32>
    %c0_16 = arith.constant 0 : index
    %46 = memref.load %arg1[%c0_16] : memref<2xi32, #tpu.memory_space<smem>>
    %c1 = arith.constant 1 : index
    %47 = memref.load %arg1[%c1] : memref<2xi32, #tpu.memory_space<smem>>
    %c0_17 = arith.constant 0 : index
    %48 = memref.load %arg2[%c0_17] : memref<2xf32, #tpu.memory_space<smem>>
    %c1_18 = arith.constant 1 : index
    %49 = memref.load %arg2[%c1_18] : memref<2xf32, #tpu.memory_space<smem>>
    %50 = vector.broadcast %46 : i32 to vector<1x128xi32>
    %51 = arith.cmpi sge, %45, %50 : vector<1x128xi32>
    %cst_19 = arith.constant 0.000000e+00 : f32
    %52 = vector.broadcast %48 : f32 to vector<1x128xf32>
    %53 = vector.broadcast %cst_19 : f32 to vector<1x128xf32>
    %54 = arith.select %51, %52, %53 : vector<1x128xi1>, vector<1x128xf32>
    %55 = vector.broadcast %47 : i32 to vector<1x128xi32>
    %56 = arith.cmpi sge, %45, %55 : vector<1x128xi32>
    %cst_20 = arith.constant 0.000000e+00 : f32
    %57 = vector.broadcast %49 : f32 to vector<1x128xf32>
    %58 = vector.broadcast %cst_20 : f32 to vector<1x128xf32>
    %59 = arith.select %56, %57, %58 : vector<1x128xi1>, vector<1x128xf32>
    %60 = arith.addf %54, %59 : vector<1x128xf32>
    %61 = vector.broadcast %60 : vector<1x128xf32> to vector<8x128xf32>
    %62 = arith.subf %44, %61 : vector<8x128xf32>
    %63 = arith.mulf %62, %62 : vector<8x128xf32>
    %64 = vector.shape_cast %63 : vector<8x128xf32> to vector<1x8x128xf32>
    %cst_21 = arith.constant dense<0.000000e+00> : vector<1xf32>
    %65 = vector.multi_reduction <add>, %64, %cst_21 [1, 2] : vector<1x8x128xf32> to vector<1xf32>
    %66 = vector.shape_cast %65 : vector<1xf32> to vector<1x1x1xf32>
    %67 = vector.extract %66[0, 0, 0] : f32 from vector<1x1x1xf32>
    %c0_22 = arith.constant 0 : index
    %68 = memref.load %arg5[%c0_22] : memref<1xf32, #tpu.memory_space<smem>>
    %69 = arith.addf %68, %67 : f32
    %c0_23 = arith.constant 0 : index
    %70 = memref.load %arg5[%c0_23] : memref<1xf32, #tpu.memory_space<smem>>
    memref.store %69, %arg5[%c0_23] : memref<1xf32, #tpu.memory_space<smem>>
    %c0_i32_24 = arith.constant 0 : i32
    %71 = arith.cmpi eq, %arg0, %c0_i32_24 : i32
    %72 = arith.extui %71 : i1 to i32
    %c0_i32_25 = arith.constant 0 : i32
    %73 = arith.cmpi ne, %72, %c0_i32_25 : i32
    scf.if %73 {
      %c0_26 = arith.constant 0 : index
      %74 = memref.load %arg5[%c0_26] : memref<1xf32, #tpu.memory_space<smem>>
      %cst_27 = arith.constant 1.250000e-01 : f32
      %75 = arith.mulf %74, %cst_27 : f32
      %c0_28 = arith.constant 0 : index
      %76 = memref.load %arg4[%c0_28] : memref<1xf32, #tpu.memory_space<smem>>
      memref.store %75, %arg4[%c0_28] : memref<1xf32, #tpu.memory_space<smem>>
    } else {
    }
    return
  }
  func.func @transform_0(%arg0: i32) -> i32 {
    %c0_i32 = arith.constant 0 : i32
    %c0_i32_0 = arith.constant 0 : i32
    return %c0_i32 : i32
  }
  func.func @transform_1(%arg0: i32) -> i32 {
    %c0_i32 = arith.constant 0 : i32
    %c0_i32_0 = arith.constant 0 : i32
    return %c0_i32 : i32
  }
  func.func @transform_2(%arg0: i32) -> (i32, i32) {
    %c0_i32 = arith.constant 0 : i32
    %c0_i32_0 = arith.constant 0 : i32
    return %arg0, %c0_i32 : i32, i32
  }
  func.func @transform_3(%arg0: i32) -> i32 {
    %c0_i32 = arith.constant 0 : i32
    %c0_i32_0 = arith.constant 0 : i32
    return %c0_i32 : i32
  }
}

</mosaic_0001>

<bundles_post_ra>
// kernel: crps_pallas.1
= control target key start
LH: loop header
LB: loop body
LE: loop exit
PB: predicated region body
PF: predicated region fallthrough
CT: control target
= control target key end

     0   :  { %8 = vsyncpa [#allocation5], 0  ;;  %s410_s0 = inlined_call_operand.vmem [shape: s32[2], index: 0, kind: input, shape index: {}]   ;;  %s411_s1 = inlined_call_operand.vmem [shape: f32[2], index: 1, kind: input, shape index: {}]   ;;  %s412_s2 = inlined_call_operand.vmem [shape: f32[8,128], index: 2, kind: input, shape index: {}]   ;;  %s413_s3 = inlined_call_operand.hbm [shape: f32[1], index: 3, kind: output, shape index: {}]  }
   0x1   :  { %9 = vsyncpa [#allocation7], 0 }
   0x2   :  { %10 = vsyncpa [#allocation4], 0  ;;  %s16_s14 = sshll.u32 %s410_s0, 4  ;;  %s25_s17 = sshll.u32 %s411_s1, 4  ;;  %s17_s14 = int_to_ptr.vmem [resolvable:$true] %s16_s14  ;;  %s26_s17 = int_to_ptr.vmem [resolvable:$true] %s25_s17 }
   0x3   :  { %s334_s18 = smov [#allocation3]   ;;  %s335_s19 = smov [#allocation6]  }
   0x4   :  { %19 = dma.vmem_to_smem %s17_s14, 16, %s334_s18, [#allocation5]  }
   0x5   :  { %28 = dma.vmem_to_smem %s26_s17, 16, %s335_s19, [#allocation7]  }
   0x6   :  { %328 = dma.done.wait [#allocation5], 16  }
   0x7   :  { %329 = vsyncadd [#allocation5], 4294967280 }
   0x8   :  { %330 = dma.done.wait [#allocation7], 16  }
   0x9   :  { %331 = vsyncadd [#allocation7], 4294967280 }
   0xa   :  { %39 = sfence }
   0xb   :  { %v46_v0 = vld [vmem:[%s412_s2] sm:$0xff]  ;;  %v104_v13 = vlaneseq  ;;  %v336_v22 = vmov 1.0   ;;  %s191_s0 = sld [smem:[#allocation3]]  ;;  %s231_s25 = sshll.u32 %s413_s3, 4  ;;  %s232_s25 = int_to_ptr.hbm [resolvable:$true] %s231_s25 }
   0xc   :  { %v48_v1 = vmin.f32 %v46_v0, 20.0  ;;  %vm47_vm1 = vcmp.gt.f32.partialorder %v46_v0, 20.0  ;;  %s276_s1 = sld [smem:[#allocation3 + $0x1]]  ;;  %s337_s28 = smov [#allocation8]  }
   0xd   :  { %v367_v14 = vshrl.u32 %v104_v13, 7  ;;  %v369_v15 = vand.u32 127, %v104_v13  ;;  %s193_s2 = sld [smem:[#allocation6]] }
   0xe   :  { %v49_v2 = vmul.f32 1.442695, %v48_v1  ;;  %s277_s22 = sld [smem:[#allocation6 + $0x1]] }
   0xf   :  { %v120_v16 = vadd.s32 120, %v367_v14  ;;  %v119_v17 = vadd.s32 112, %v367_v14  ;;  %v118_v18 = vadd.s32 104, %v367_v14  ;;  %v117_v20 = vadd.s32 96, %v367_v14 }
  0x10   :  { %284 = vpow2.f32 %v49_v2  ;;  %v116_v23 = vadd.s32 88, %v367_v14  ;;  %v115_v38 = vadd.s32 80, %v367_v14  ;;  %v114_v39 = vadd.s32 72, %v367_v14 }
  0x11   :  { %vm138_vm2 = vcmp.le.s32.totalorder %v120_v16, %v369_v15  ;;  %vm137_vm3 = vcmp.le.s32.totalorder %v119_v17, %v369_v15  ;;  %vm136_vm4 = vcmp.le.s32.totalorder %v118_v18, %v369_v15  ;;  %vm135_vm5 = vcmp.le.s32.totalorder %v117_v20, %v369_v15 }
  0x12   :  { %260 = vmatpush.msk.msra.mxu0 %vm138_vm2, %v336_v22  ;;  %vm134_vm6 = vcmp.le.s32.totalorder %v116_v23, %v369_v15  ;;  %vm133_vm11 = vcmp.le.s32.totalorder %v115_v38, %v369_v15  ;;  %vm132_vm12 = vcmp.le.s32.totalorder %v114_v39, %v369_v15  ;;  %v113_v40 = vadd.s32 64, %v367_v14 }
  0x13   :  { %v112_v41 = vadd.s32 56, %v367_v14  ;;  %v111_v42 = vadd.s32 48, %v367_v14  ;;  %v110_v43 = vadd.s32 40, %v367_v14  ;;  %v109_v44 = vadd.s32 32, %v367_v14 }
  0x14   :  { %261 = vmatpush.msk.msra.mxu0 %vm137_vm3, %v336_v22  ;;  %vm131_vm13 = vcmp.le.s32.totalorder %v113_v40, %v369_v15  ;;  %v108_v45 = vadd.s32 24, %v367_v14  ;;  %v107_v46 = vadd.s32 16, %v367_v14  ;;  %v106_v47 = vadd.s32 8, %v367_v14 }
  0x15   :  { %vm130_vm14 = vcmp.le.s32.totalorder %v112_v41, %v369_v15  ;;  %vm129_vm15 = vcmp.le.s32.totalorder %v111_v42, %v369_v15  ;;  %v195_v62 = vstv %s191_s0  ;;  %v199_v63 = vstv %s276_s1 }
  0x16   :  { %v285_v3 = vpop.eup %284  ;;  %262 = vmatpush.msk.msra.mxu0 %vm136_vm4, %v336_v22  ;;  %vm126_vm2 = vcmp.le.s32.totalorder %v108_v45, %v369_v15  ;;  %vm125_vm3 = vcmp.le.s32.totalorder %v107_v46, %v369_v15  ;;  %vm124_vm4 = vcmp.le.s32.totalorder %v106_v47, %v369_v15  ;;  %v201_v1 = vstv %s277_s22 }
  0x17   :  { %v51_v4 = vadd.f32 1.0, %v285_v3  ;;  %v54_v5 = vmul.f32 -0.5, %v285_v3  ;;  %v57_v7 = vand.u32 2147483647, %v285_v3 }
  0x18   :  { %263 = vmatpush.msk.msra.mxu0 %vm135_vm5, %v336_v22  ;;  %vm123_vm5 = vcmp.le.s32.totalorder %v367_v14, %v369_v15 }
  0x19   :  { %286 = vlog2.f32 %v51_v4  ;;  %v55_v6 = vadd.f32 1.0, %v54_v5  ;;  %vm58_vm0 = vcmp.lt.f32.partialorder %v57_v7, 0.0004427343 }
  0x1a   :  { %264 = vmatpush.msk.msra.mxu0 %vm134_vm6, %v336_v22 }
  0x1b   :  { %v56_v8 = vmul.f32 %v285_v3, %v55_v6 }
  0x1c   :  { %265 = vmatpush.msk.msra.mxu0 %vm133_vm11, %v336_v22  ;;  %vm196_vm11 = vcmp.ge.s32.totalorder %v369_v15, %v195_v62 }
  0x1e   :  { %266 = vmatpush.msk.msra.mxu0 %vm132_vm12, %v336_v22  ;;  %vm200_vm12 = vcmp.ge.s32.totalorder %v369_v15, %v199_v63 }
  0x1f   :  { %v287_v9 = vpop.eup %286  ;;  %v202_v3 = vsel %vm200_vm12, %v201_v1, 0.0 }
  0x20   :  { %v53_v10 = vmul.f32 0.6931472, %v287_v9  ;;  %267 = vmatpush.msk.msra.mxu0 %vm131_vm13, %v336_v22 }
  0x22   :  { %v59_v11 = vsel %vm58_vm0, %v56_v8, %v53_v10  ;;  %268 = vmatpush.msk.msra.mxu0 %vm130_vm14, %v336_v22  ;;  %vm128_vm0 = vcmp.le.s32.totalorder %v110_v43, %v369_v15 }
  0x23   :  { %v60_v12 = vsel %vm47_vm1, %v46_v0, %v59_v11  ;;  %vm127_vm1 = vcmp.le.s32.totalorder %v109_v44, %v369_v15  ;;  %v197_v0 = vstv %s193_s2 }
  0x24   :  { %61 = vadd.xlane.f32.xlu0 %v60_v12  ;;  %v79_v30 = vadd.f32 7.8125e-10, %v60_v12  ;;  %269 = vmatpush.msk.msra.mxu0 %vm129_vm15, %v336_v22  ;;  %v198_v2 = vsel %vm196_vm11, %v197_v0, 0.0 }
  0x25   :  { %v203_v4 = vadd.f32 %v202_v3, %v198_v2 }
  0x26   :  { %270 = vmatpush.msk.msra.mxu0 %vm128_vm0, %v336_v22 }
  0x28   :  { %271 = vmatpush.msk.msra.mxu0 %vm127_vm1, %v336_v22 }
  0x2a   :  { %272 = vmatpush.msk.msra.mxu0 %vm126_vm2, %v336_v22 }
  0x2c   :  { %273 = vmatpush.msk.msra.mxu0 %vm125_vm3, %v336_v22 }
  0x2e   :  { %274 = vmatpush.msk.msra.mxu0 %vm124_vm4, %v336_v22 }
  0x30   :  { %275 = vmatpush.msk.msra.mxu0 %vm123_vm5, %v336_v22 }
  0x97   :  { %v62_v19 = vpop.xlane.xlu0 %61 }
  0x98   :  { %v63_v21 = vadd.f32 1e-07, %v62_v19 }
  0x9a   :  { %288 = vrcp.f32 %v63_v21  ;;  %v75_v27 = vand.u32 2147483648, %v63_v21  ;;  %v73_v29 = vand.u32 2147483647, %v63_v21  ;;  %vm69_vm8 = vweird.f32 %v63_v21 }
  0x9c   :  { %v76_v32 = vor.u32 1.1754944e-38, %v75_v27  ;;  %vm74_vm10 = vcmp.eq.f32.partialorder %v73_v29, 8.507059e+37 }
  0xa0   :  { %v289_v24 = vpop.eup %288 }
  0xa1   :  { %v65_v25 = vmul.f32 %v289_v24, %v63_v21  ;;  %vm70_vm7 = vweird.f32 %v289_v24 }
  0xa2   :  { %vm71_vm9 = vmor %vm69_vm8, %vm70_vm7 }
  0xa3   :  { %v66_v26 = vsub.f32 1.0, %v65_v25 }
  0xa5   :  { %v67_v28 = vmul.f32 %v289_v24, %v66_v26 }
  0xa7   :  { %v68_v31 = vadd.f32 %v289_v24, %v67_v28 }
  0xa9   :  { %v72_v33 = vsel %vm71_vm9, %v289_v24, %v68_v31 }
  0xaa   :  { %v77_v34 = vsel %vm74_vm10, %v76_v32, %v72_v33 }
  0xab   :  { %v80_v35 = vmul.f32 %v79_v30, %v77_v34 }
  0xad   :  { %v243_v36 = vadd.f32 -0.006, %v80_v35 }
  0xaf   :  { %v82_v37 = vmax.f32 %v243_v36, 0.0 }
  0xb1   :  { %83 = vadd.xlane.f32.xlu0 %v82_v37 }
 0x124   :  { %v84_v48 = vpop.xlane.xlu0 %83 }
 0x125   :  { %vm85_vm6 = vcmp.gt.f32.partialorder %v84_v48, 0.0 }
 0x126   :  { %v86_v49 = vsel %vm85_vm6, %v84_v48, 1.0 }
 0x127   :  { %290 = vrcp.f32 %v86_v49  ;;  %v98_v53 = vand.u32 2147483648, %v86_v49  ;;  %v96_v55 = vand.u32 2147483647, %v86_v49  ;;  %vm92_vm8 = vweird.f32 %v86_v49 }
 0x129   :  { %v99_v57 = vor.u32 1.1754944e-38, %v98_v53  ;;  %vm97_vm10 = vcmp.eq.f32.partialorder %v96_v55, 8.507059e+37 }
 0x12d   :  { %v291_v50 = vpop.eup %290 }
 0x12e   :  { %v88_v51 = vmul.f32 %v291_v50, %v86_v49  ;;  %vm93_vm7 = vweird.f32 %v291_v50 }
 0x12f   :  { %vm94_vm9 = vmor %vm92_vm8, %vm93_vm7 }
 0x130   :  { %v89_v52 = vsub.f32 1.0, %v88_v51 }
 0x132   :  { %v90_v54 = vmul.f32 %v291_v50, %v89_v52 }
 0x134   :  { %v91_v56 = vadd.f32 %v291_v50, %v90_v54 }
 0x136   :  { %v95_v58 = vsel %vm94_vm9, %v291_v50, %v91_v56 }
 0x137   :  { %v100_v59 = vsel %vm97_vm10, %v99_v57, %v95_v58 }
 0x138   :  { %v102_v60 = vsel %vm85_vm6, %v100_v59, 0.0 }
 0x139   :  { %v103_v61 = vmul.f32 %v102_v60, %v82_v37 }
 0x13b   :  { %187 = vmatmul.f32.vlgmr.msra.gmra.mxu0 %v103_v61 }
 0x1b8   :  { %v188_v5 = vpop.f32.mrf.mxu0 }
 0x1b9   :  { %v204_v6 = vsub.f32 %v188_v5, %v203_v4 }
 0x1bb   :  { %v205_v7 = vmul.f32 %v204_v6, %v204_v6 }
 0x1bd   :  { %206 = vadd.xlane.f32.xlu1 %v205_v7 }
 0x230   :  { %v207_v8 = vpop.xlane.xlu1 %206 }
 0x231   :  { %v208_v9 = vrot.slane %v207_v8, 4 }
 0x233   :  { %v209_v10 = vadd.f32 %v208_v9, %v207_v8 }
 0x235   :  { %v210_v11 = vrot.slane %v209_v10, 2 }
 0x237   :  { %v211_v12 = vadd.f32 %v210_v11, %v209_v10 }
 0x239   :  { %v212_v13 = vrot.slane %v211_v12, 1 }
 0x23b   :  { %v213_v14 = vadd.f32 %v212_v13, %v211_v12 }
 0x23d   :  { %278 = vpush %v213_v14 }
 0x26e   :  { %s279_s26 = spop %278 }
 0x26f   :  { %s223_s27 = smul.f32 0.125, %s279_s26 }
 0x271   :  { %225 = sst [smem:[#allocation8]] %s223_s27 }
 0x272   :  { %234 = dma.smem_to_hbm %s337_s28, 16, %s232_s25, [#allocation4]  }
 0x273   :  { %332 = dma.done.wait [#allocation4], 16  }
 0x274   :  { %333 = vsyncadd [#allocation4], 4294967280 }
 0x275   :  { %239 = sfence }
 0x276   :  { %240 = vsyncpa [#allocation4], 1 }
 0x277   :  { %241 = vsyncpa [#allocation5], 1 }
 0x278   :  { %242 = vsyncpa [#allocation7], 1 }

</bundles_post_ra>
